<compile_context>
chip_gen: v5e
topology: v5e:2x2
jax: 0.10.0
libtpu: 0.0.40
codegen_flags: <defaults>
</compile_context>

<pallas_src>
import functools

import jax
import jax.numpy as jnp
import numpy as np
from jax.experimental import pallas as pl
from jax.experimental.pallas import tpu as pltpu

LANE = 128     # vreg lane count    (last-dim granularity)
SUBLANE = 8    # vreg sublane count (second-to-last-dim granularity)


def _round_up(v, m):
    return (v + m - 1) // m * m


# ---------------------------------------------------------------------------
# Kernel bodies
# ---------------------------------------------------------------------------
def _gemm_bn_relu_kernel(p_ref, w_ref, s_ref, b_ref, o_ref):
    """Packed path: one lane-dense GEMM + folded BN + ReLU, no in-kernel copies."""
    acc = jnp.dot(p_ref[...], w_ref[...], preferred_element_type=jnp.float32)
    y = jnp.maximum(acc * s_ref[...] + b_ref[...], 0.0)
    o_ref[...] = y.astype(o_ref.dtype)


def _conv_bn_relu_kernel(x_ref, w_ref, s_ref, b_ref, o_ref, *,
                         KH, KW, S, TH, W_out):
    """General path: KH*KW partial dots accumulated in f32 (no im2col patch)."""
    x = x_ref[0]                                   # (TH_in, W_in_p, Cin_p) bf16
    m = TH * W_out
    acc = jnp.zeros((m, w_ref.shape[-1]), jnp.float32)
    for dy in range(KH):
        for dx in range(KW):
            # TODO(synk): for stride > 1 a host-side space-to-depth of the W
            # axis would avoid the strided slice below (review item 6).
            win = x[dy:dy + (TH - 1) * S + 1:S,
                    dx:dx + (W_out - 1) * S + 1:S, :]        # (TH, W_out, Cin_p)
            acc = acc + jnp.dot(win.reshape(m, -1), w_ref[dy * KW + dx],
                                preferred_element_type=jnp.float32)
    y = jnp.maximum(acc * s_ref[...] + b_ref[...], 0.0)      # folded BN + ReLU
    o_ref[...] = y.reshape(o_ref.shape).astype(o_ref.dtype)  # bf16 store


# ---------------------------------------------------------------------------
# Packed small-Cin / 1x1 path: dense tap packing into one 128-lane contraction
# ---------------------------------------------------------------------------
def _forward_packed(x_nchw, w_oihw, scale, bias, *, KH, KW, S, P, H_out, W_out,
                    Cout, Cout_p):
    N, Cin, H, W = x_nchw.shape
    Kc = KH * KW * Cin
    Kc_p = _round_up(Kc, LANE)

    # im2col weights: row order (dy, dx, cin), zero padded, bf16.
    w2d = jnp.transpose(w_oihw, (2, 3, 1, 0)).reshape(Kc, Cout)
    w2d = jnp.zeros((Kc_p, Cout_p), jnp.float32).at[:Kc, :Cout].set(w2d)
    w2d = w2d.astype(jnp.bfloat16)

    # Host-side im2col.  For the shapes this path is selected for, the packed
    # patch matrix is no bigger in HBM than the channel-padded NHWC array the
    # general path would need, all real taps land in one lane-dense
    # contraction, and the kernel has zero window-copy work.
    x = jnp.transpose(x_nchw, (0, 2, 3, 1)).astype(jnp.bfloat16)
    x = jnp.pad(x, ((0, 0), (P, P), (P, P), (0, 0)))
    cols = [x[:, dy:dy + (H_out - 1) * S + 1:S,
              dx:dx + (W_out - 1) * S + 1:S, :]
            for dy in range(KH) for dx in range(KW)]
    patches = jnp.concatenate(cols, axis=-1).reshape(N * H_out * W_out, Kc)

    M = N * H_out * W_out
    TM = 256 if M >= 256 else _round_up(M, SUBLANE)
    M_pad = _round_up(M, TM)
    patches = jnp.pad(patches, ((0, M_pad - M), (0, Kc_p - Kc)))

    TN = 2 * LANE if Cout_p % (2 * LANE) == 0 else LANE
    n_m, n_n = M_pad // TM, Cout_p // TN

    s2d = jnp.zeros((1, Cout_p), jnp.float32).at[0, :Cout].set(scale)
    b2d = jnp.zeros((1, Cout_p), jnp.float32).at[0, :Cout].set(bias)

    flops = 2 * M_pad * Kc_p * Cout_p
    bytes_accessed = (M_pad * Kc_p * 2 + Kc_p * Cout_p * 2
                      + M_pad * Cout_p * 2 + 8 * Cout_p)

    out = pl.pallas_call(
        _gemm_bn_relu_kernel,
        out_shape=jax.ShapeDtypeStruct((M_pad, Cout_p), jnp.bfloat16),
        grid=(n_m, n_n),
        in_specs=[
            pl.BlockSpec((TM, Kc_p), lambda i, j: (i, 0)),
            # constant over i -> weights / scale / bias stay VMEM resident
            pl.BlockSpec((Kc_p, TN), lambda i, j: (0, j)),
            pl.BlockSpec((1, TN), lambda i, j: (0, j)),
            pl.BlockSpec((1, TN), lambda i, j: (0, j)),
        ],
        out_specs=pl.BlockSpec((TM, TN), lambda i, j: (i, j)),
        compiler_params=pltpu.CompilerParams(
            dimension_semantics=("parallel", "arbitrary"),
            vmem_limit_bytes=48 * 1024 * 1024),
        cost_estimate=pl.CostEstimate(flops=flops, transcendentals=0,
                                      bytes_accessed=bytes_accessed),
    )(patches, w2d, s2d, b2d)

    return out[:M, :Cout].reshape(N, H_out, W_out, Cout)     # NHWC bf16


# ---------------------------------------------------------------------------
# General path: halo'd row tiles read via element-offset windows
# ---------------------------------------------------------------------------
def _forward_general(x_nchw, w_oihw, scale, bias, *, KH, KW, S, P, H_out,
                     W_out, Cout, Cout_p, row_target):
    N, Cin, H, W = x_nchw.shape
    Cin_p = _round_up(Cin, LANE)

    # Row tile: ~row_target output pixels per matmul (fills the 256-row MXU on
    # v6e/v7x); TH is a multiple of 8 so M = TH*W_out stays sublane aligned.
    TH = -(-row_target // W_out)
    TH = min(_round_up(TH, SUBLANE), _round_up(H_out, SUBLANE))
    n_t = -(-H_out // TH)
    H_out_pad = n_t * TH
    TH_in = (TH - 1) * S + KH
    H_in_need = (H_out_pad - 1) * S + KH
    W_in = _round_up(W + 2 * P, SUBLANE)
    M_tile = TH * W_out

    TN = 2 * LANE if Cout_p % (2 * LANE) == 0 else LANE
    n_n = Cout_p // TN

    # NHWC bf16, spatial zero-pad, channel pad to a lane multiple.  Overlapping
    # (halo) row windows are read straight out of this array by the kernel --
    # no extra halo-gather copy in HBM.
    x = jnp.transpose(x_nchw, (0, 2, 3, 1)).astype(jnp.bfloat16)
    x = jnp.pad(x, ((0, 0),
                    (P, max(0, H_in_need - H - P)),
                    (P, W_in - W - P),
                    (0, Cin_p - Cin)))[:, :H_in_need]

    # Weights: (tap, cin, cout) bf16, zero padded channels.
    w_taps = jnp.transpose(w_oihw, (2, 3, 1, 0)).reshape(KH * KW, Cin, Cout)
    w3d = jnp.zeros((KH * KW, Cin_p, Cout_p), jnp.float32)
    w3d = w3d.at[:, :Cin, :Cout].set(w_taps).astype(jnp.bfloat16)

    s2d = jnp.zeros((1, Cout_p), jnp.float32).at[0, :Cout].set(scale)
    b2d = jnp.zeros((1, Cout_p), jnp.float32).at[0, :Cout].set(bias)

    kernel = functools.partial(_conv_bn_relu_kernel, KH=KH, KW=KW, S=S, TH=TH,
                               W_out=W_out)

    flops = 2 * N * n_t * M_tile * KH * KW * Cin_p * Cout_p
    bytes_accessed = (N * n_t * TH_in * W_in * Cin_p * 2
                      + KH * KW * Cin_p * Cout_p * 2
                      + N * n_t * M_tile * Cout_p * 2 + 8 * Cout_p)

    out = pl.pallas_call(
        kernel,
        out_shape=jax.ShapeDtypeStruct((N, n_t, M_tile, Cout_p), jnp.bfloat16),
        grid=(N, n_t, n_n),
        in_specs=[
            # Overlapping halo row windows: element-offset indexing on H.
            pl.BlockSpec((1, pl.Element(TH_in), W_in, Cin_p),
                         lambda b, r, j: (b, r * (TH * S), 0, 0)),
            # Constant block index across (b, r) -> weights / scale / bias stay
            # VMEM resident; only the Cout tile axis refreshes them.
            pl.BlockSpec((KH * KW, Cin_p, TN), lambda b, r, j: (0, 0, j)),
            pl.BlockSpec((1, TN), lambda b, r, j: (0, j)),
            pl.BlockSpec((1, TN), lambda b, r, j: (0, j)),
        ],
        out_specs=pl.BlockSpec((1, 1, M_tile, TN),
                               lambda b, r, j: (b, r, 0, j)),
        compiler_params=pltpu.CompilerParams(
            dimension_semantics=("parallel", "parallel", "arbitrary"),
            vmem_limit_bytes=48 * 1024 * 1024),
        cost_estimate=pl.CostEstimate(flops=flops, transcendentals=0,
                                      bytes_accessed=bytes_accessed),
    )(x, w3d, s2d, b2d)

    out = out.reshape(N, H_out_pad, W_out, Cout_p)[:, :H_out, :, :Cout]
    return out                                               # NHWC bf16


# ---------------------------------------------------------------------------
# Public entry point (matches ConvBnRelu.forward, NCHW f32 in / out)
# ---------------------------------------------------------------------------
@functools.partial(jax.jit,
                   static_argnames=("stride", "padding", "eps", "row_target"))
def conv_bn_relu_forward(x_nchw, w_oihw, conv_bias, gamma, beta, run_mean,
                         run_var, *, stride=1, padding=1, eps=1e-5,
                         row_target=256):
    N, Cin, H, W = x_nchw.shape
    Cout, _, KH, KW = w_oihw.shape
    S, P = stride, padding
    H_out = (H + 2 * P - KH) // S + 1
    W_out = (W + 2 * P - KW) // S + 1
    Cout_p = _round_up(Cout, LANE)

    # Fold conv bias + BatchNorm (running statistics, inference form) into one
    # per-channel scale/bias applied on the f32 accumulator inside the kernel.
    # TODO(synk): training-mode BatchNorm (batch statistics) is not computed.
    inv_std = gamma / jnp.sqrt(run_var + eps)
    scale = inv_std
    bias = beta + inv_std * (conv_bias - run_mean)

    common = dict(KH=KH, KW=KW, S=S, P=P, H_out=H_out, W_out=W_out,
                  Cout=Cout, Cout_p=Cout_p)
    Kc_p = _round_up(KH * KW * Cin, LANE)
    Cin_p = _round_up(Cin, LANE)
    # Dense tap packing wins whenever the packed patch matrix is no bigger
    # than the channel-padded NHWC input (always true for 1x1 convs and
    # small-Cin first layers); otherwise use the halo'd row-tile kernel.
    if Kc_p * H_out * W_out <= Cin_p * (H + 2 * P) * (W + 2 * P):
        out_nhwc = _forward_packed(x_nchw, w_oihw, scale, bias, **common)
    else:
        out_nhwc = _forward_general(x_nchw, w_oihw, scale, bias,
                                    row_target=row_target, **common)

    # bf16 NHWC -> NCHW transpose (half the bytes), then f32 to match PyTorch.
    return jnp.transpose(out_nhwc, (0, 3, 1, 2)).astype(jnp.float32)


# ---------------------------------------------------------------------------
# Pure-JAX reference (mirrors the kernel's bf16 operand / bf16 store rounding)
# ---------------------------------------------------------------------------
def reference_forward(x, w, conv_b, gamma, beta, mean, var, *, stride, padding,
                      eps=1e-5):
    xb = x.astype(jnp.bfloat16).astype(jnp.float32)
    wb = w.astype(jnp.bfloat16).astype(jnp.float32)
    o = jax.lax.conv_general_dilated(
        xb, wb, (stride, stride),
        ((padding, padding), (padding, padding)),
        dimension_numbers=("NCHW", "OIHW", "NCHW"),
        precision=jax.lax.Precision.HIGHEST)
    o = o + conv_b.reshape(1, -1, 1, 1)
    inv = (gamma / jnp.sqrt(var + eps)).reshape(1, -1, 1, 1)
    o = (o - mean.reshape(1, -1, 1, 1)) * inv + beta.reshape(1, -1, 1, 1)
    o = jnp.maximum(o, 0.0)
    return o.astype(jnp.bfloat16).astype(jnp.float32)   # kernel stores bf16


if __name__ == "__main__":
    root = jax.random.PRNGKey(0)

    def make_inputs(key, N, Cin, Cout, H, W, K):
        ks = jax.random.split(key, 7)
        x = jax.random.normal(ks[0], (N, Cin, H, W), jnp.float32)
        w = 0.1 * jax.random.normal(ks[1], (Cout, Cin, K, K), jnp.float32)
        cb = 0.1 * jax.random.normal(ks[2], (Cout,), jnp.float32)
        gamma = 1.0 + 0.1 * jax.random.normal(ks[3], (Cout,), jnp.float32)
        beta = 0.1 * jax.random.normal(ks[4], (Cout,), jnp.float32)
        mean = 0.1 * jax.random.normal(ks[5], (Cout,), jnp.float32)
        var = jnp.abs(jax.random.normal(ks[6], (Cout,), jnp.float32)) + 0.5
        return x, w, cb, gamma, beta, mean, var

    # (N, Cin, Cout, H, W, K, stride, padding)
    configs = [
        (2, 4, 8, 16, 16, 3, 1, 1),    # module config -> packed small-Cin path
        (2, 4, 8, 16, 16, 3, 2, 1),    # stride 2      -> packed path
        (2, 32, 16, 24, 24, 3, 1, 1),  # larger Cin    -> general halo'd path
    ]
    keys = jax.random.split(root, len(configs))
    for (N, Cin, Cout, H, W, K, s, p), k in zip(configs, keys):
        args = make_inputs(k, N, Cin, Cout, H, W, K)
        out = jax.block_until_ready(
            conv_bn_relu_forward(*args, stride=s, padding=p))
        ref = reference_forward(*args, stride=s, padding=p)
        np.testing.assert_allclose(np.asarray(out), np.asarray(ref),
                                   rtol=2e-2, atol=2e-2)

    print("KERNEL_OK")
</pallas_src>

<mosaic_0001>
module attributes {stable_mosaic.version = 11 : i64} {
  func.func @_gemm_bn_relu_kernel(%arg0: i32, %arg1: i32, %arg2: memref<256x128xbf16, #tpu.memory_space<vmem>>, %arg3: memref<128x128xbf16, #tpu.memory_space<vmem>>, %arg4: memref<1x128xf32, #tpu.memory_space<vmem>>, %arg5: memref<1x128xf32, #tpu.memory_space<vmem>>, %arg6: memref<256x128xbf16, #tpu.memory_space<vmem>>) attributes {dimension_semantics = [#tpu.dimension_semantics<parallel>, #tpu.dimension_semantics<arbitrary>], iteration_bounds = array<i64: 2, 1>, scalar_prefetch = 0 : i64, scratch_operands = 0 : i64, tpu.core_type = #tpu.core_type<tc>, window_params = [{transform_indices = @transform_0, window_bounds = array<i64: 256, 128>}, {transform_indices = @transform_1, window_bounds = array<i64: 128, 128>}, {transform_indices = @transform_2, window_bounds = array<i64: 1, 128>}, {transform_indices = @transform_3, window_bounds = array<i64: 1, 128>}, {transform_indices = @transform_4, window_bounds = array<i64: 256, 128>}]} {
    %c0 = arith.constant 0 : index
    %c0_0 = arith.constant 0 : index
    %0 = vector.load %arg2[%c0, %c0_0] : memref<256x128xbf16, #tpu.memory_space<vmem>>, vector<256x128xbf16>
    %c0_1 = arith.constant 0 : index
    %c0_2 = arith.constant 0 : index
    %1 = vector.load %arg3[%c0_1, %c0_2] : memref<128x128xbf16, #tpu.memory_space<vmem>>, vector<128x128xbf16>
    %cst = arith.constant dense<0.000000e+00> : vector<256x128xf32>
    %2 = tpu.matmul %0, %1, %cst {dimension_numbers = #tpu.dot_dimension_numbers<[1], [0], [0], [1], [0, 0, 1, 1], [], []>} : vector<256x128xbf16>, vector<128x128xbf16>, vector<256x128xf32> -> vector<256x128xf32>
    %c0_3 = arith.constant 0 : index
    %c0_4 = arith.constant 0 : index
    %3 = vector.load %arg4[%c0_3, %c0_4] : memref<1x128xf32, #tpu.memory_space<vmem>>, vector<1x128xf32>
    %4 = vector.broadcast %3 : vector<1x128xf32> to vector<256x128xf32>
    %5 = arith.mulf %2, %4 : vector<256x128xf32>
    %c0_5 = arith.constant 0 : index
    %c0_6 = arith.constant 0 : index
    %6 = vector.load %arg5[%c0_5, %c0_6] : memref<1x128xf32, #tpu.memory_space<vmem>>, vector<1x128xf32>
    %7 = vector.broadcast %6 : vector<1x128xf32> to vector<256x128xf32>
    %8 = arith.addf %5, %7 : vector<256x128xf32>
    %cst_7 = arith.constant 0.000000e+00 : f32
    %9 = vector.broadcast %cst_7 : f32 to vector<256x128xf32>
    %10 = arith.maximumf %8, %9 : vector<256x128xf32>
    %11 = arith.truncf %10 : vector<256x128xf32> to vector<256x128xbf16>
    %c0_8 = arith.constant 0 : index
    %c0_9 = arith.constant 0 : index
    %12 = vector.load %arg6[%c0_8, %c0_9] : memref<256x128xbf16, #tpu.memory_space<vmem>>, vector<256x128xbf16>
    tpu.vector_store %arg6[%c0_8, %c0_9], %11 {strides = array<i32>} : memref<256x128xbf16, #tpu.memory_space<vmem>>, vector<256x128xbf16>,
    return
  }
  func.func @transform_0(%arg0: i32, %arg1: i32) -> (i32, i32) {
    %c0_i32 = arith.constant 0 : i32
    %c0_i32_0 = arith.constant 0 : i32
    return %arg0, %c0_i32 : i32, i32
  }
  func.func @transform_1(%arg0: i32, %arg1: i32) -> (i32, i32) {
    %c0_i32 = arith.constant 0 : i32
    %c0_i32_0 = arith.constant 0 : i32
    return %c0_i32, %arg1 : i32, i32
  }
  func.func @transform_2(%arg0: i32, %arg1: i32) -> (i32, i32) {
    %c0_i32 = arith.constant 0 : i32
    %c0_i32_0 = arith.constant 0 : i32
    return %c0_i32, %arg1 : i32, i32
  }
  func.func @transform_3(%arg0: i32, %arg1: i32) -> (i32, i32) {
    %c0_i32 = arith.constant 0 : i32
    %c0_i32_0 = arith.constant 0 : i32
    return %c0_i32, %arg1 : i32, i32
  }
  func.func @transform_4(%arg0: i32, %arg1: i32) -> (i32, i32) {
    %c0_i32 = arith.constant 0 : i32
    return %arg0, %arg1 : i32, i32
  }
}

</mosaic_0001>

<bundles_post_ra>
// kernel: conv_bn_relu_forward.1
= control target key start
LH: loop header
LB: loop body
LE: loop exit
PB: predicated region body
PF: predicated region fallthrough
CT: control target
= control target key end

     0   :  { %s1157_s15 = smov 0   ;;  %s1159_s16 = smov 0   ;;  %s1334_s0 = inlined_call_operand.vmem [shape: bf16[512,128], index: 0, kind: input, shape index: {}]   ;;  %s1335_s1 = inlined_call_operand.vmem [shape: bf16[128,128], index: 1, kind: input, shape index: {}]   ;;  %s1336_s2 = inlined_call_operand.vmem [shape: f32[1,128], index: 2, kind: input, shape index: {}]   ;;  %s1337_s3 = inlined_call_operand.vmem [shape: f32[1,128], index: 3, kind: input, shape index: {}]   ;;  %s1338_s4 = inlined_call_operand.vmem [shape: bf16[512,128], index: 4, kind: output, shape index: {}]  }
   0x1   :  { %s1161_s17 = smov 0  }
   0x2 LB: > { %s26_s18 = sadd.s32 1, %s1126_s16  ;;  %p836_p0 = scmp.ge.s32.totalorder %s1130_s17, 1  ;;  %s1130_s17 = sphi %s1161_s17, %s14_s17   ;;  %s1126_s16 = sphi %s1159_s16, %s1340_s16   ;;  %s1122_s15 = sphi %s1157_s15, %s1339_s15  }
   0x3   : > { %p28_p1 = scmp.ge.s32.totalorder %s26_s18, 2  ;;  %p202_p2 = scmp.lt.s32.totalorder %s1130_s17, 3 }
   0x5   : > { %s1342_s18 = smov (%p28_p1, %s26_s18), 0  ;;  %p203_p3 = pnand %p836_p0, %p202_p2 }
   0x6   : > { %s837_s27 = sshll.u32 (!%p203_p3), %s1122_s15, 5 }
   0x7   : > { %206 = sbr.rel (%p203_p3) target bundleno = 243 (0xf3), region = 36  ;;  %p242_p4 = scmp.lt.s32.totalorder (!%p203_p3), %s837_s27, 63 }
   0xc   : > { %v962_v0 = vld [vmem:[%s1335_s1 + $0x38] sm:$0xff]  ;;  %v961_v1 = vld [vmem:[%s1335_s1 + $0x30] sm:$0xff]  ;;  %v960_v2 = vld [vmem:[%s1335_s1 + $0x28] sm:$0xff]  ;;  %s1344_s27 = smov (!%p242_p4, %s837_s27), 63 }
   0xd   : > { %458 = vmatpush.bf16.msra.mxu0 %v962_v0  ;;  %1058 = vmatpush.bf16.msra.mxu1 %v962_v0  ;;  %v959_v3 = vld [vmem:[%s1335_s1 + $0x20] sm:$0xff]  ;;  %v958_v4 = vld [vmem:[%s1335_s1 + $0x18] sm:$0xff]  ;;  %v957_v5 = vld [vmem:[%s1335_s1 + $0x10] sm:$0xff]  ;;  %s838_s8 = sshll.u32 %s1344_s27, 2 }
   0xe   : > { %1059 = vmatpush.bf16.msra.mxu2 %v962_v0  ;;  %1060 = vmatpush.bf16.msra.mxu3 %v962_v0  ;;  %v956_v6 = vld [vmem:[%s1335_s1 + $0x8] sm:$0xff]  ;;  %v955_v7 = vld [vmem:[%s1335_s1] sm:$0xff]  ;;  %s1210_s13 = scalar_lea.vmem %s1334_s0, %s838_s8  ;;  %s1253_s23 = scalar_lea.vmem %s1338_s4, %s838_s8 }
   0xf   : > { %v939_v8 = vld [vmem:[%s1210_s13] sm:$0xff]  ;;  %v940_v12 = vld [vmem:[%s1210_s13 + $0x8] sm:$0xff]  ;;  %v941_v16 = vld [vmem:[%s1210_s13 + $0x10] sm:$0xff] }
  0x10   : > { %v943_v9 = vld [vmem:[%s1210_s13 + $0x20] sm:$0xff]  ;;  %v944_v13 = vld [vmem:[%s1210_s13 + $0x28] sm:$0xff]  ;;  %v945_v17 = vld [vmem:[%s1210_s13 + $0x30] sm:$0xff] }
  0x11   : > { %459 = vmatpush.bf16.msra.mxu0 %v961_v1  ;;  %1061 = vmatpush.bf16.msra.mxu1 %v961_v1  ;;  %v947_v10 = vld [vmem:[%s1210_s13 + $0x40] sm:$0xff]  ;;  %v948_v14 = vld [vmem:[%s1210_s13 + $0x48] sm:$0xff]  ;;  %v949_v18 = vld [vmem:[%s1210_s13 + $0x50] sm:$0xff] }
  0x12   : > { %1062 = vmatpush.bf16.msra.mxu2 %v961_v1  ;;  %1063 = vmatpush.bf16.msra.mxu3 %v961_v1  ;;  %v951_v11 = vld [vmem:[%s1210_s13 + $0x60] sm:$0xff]  ;;  %v952_v15 = vld [vmem:[%s1210_s13 + $0x68] sm:$0xff]  ;;  %v953_v19 = vld [vmem:[%s1210_s13 + $0x70] sm:$0xff] }
  0x13   : > { %v942_v20 = vld [vmem:[%s1210_s13 + $0x18] sm:$0xff]  ;;  %v1231_v26 = vld [vmem:[%s1336_s2] ss:$0 sm:$0xff] }
  0x14   : > { %v946_v21 = vld [vmem:[%s1210_s13 + $0x38] sm:$0xff]  ;;  %v1237_v28 = vld [vmem:[%s1337_s3] ss:$0 sm:$0xff] }
  0x15   : > { %460 = vmatpush.bf16.msra.mxu0 %v960_v2  ;;  %1064 = vmatpush.bf16.msra.mxu1 %v960_v2  ;;  %v950_v22 = vld [vmem:[%s1210_s13 + $0x58] sm:$0xff] }
  0x16   : > { %1065 = vmatpush.bf16.msra.mxu2 %v960_v2  ;;  %1066 = vmatpush.bf16.msra.mxu3 %v960_v2  ;;  %v954_v23 = vld [vmem:[%s1210_s13 + $0x78] sm:$0xff] }
  0x19   : > { %461 = vmatpush.bf16.msra.mxu0 %v959_v3  ;;  %1067 = vmatpush.bf16.msra.mxu1 %v959_v3 }
  0x1a   : > { %1068 = vmatpush.bf16.msra.mxu2 %v959_v3  ;;  %1069 = vmatpush.bf16.msra.mxu3 %v959_v3 }
  0x1d   : > { %462 = vmatpush.bf16.msra.mxu0 %v958_v4  ;;  %1070 = vmatpush.bf16.msra.mxu1 %v958_v4 }
  0x1e   : > { %1071 = vmatpush.bf16.msra.mxu2 %v958_v4  ;;  %1072 = vmatpush.bf16.msra.mxu3 %v958_v4 }
  0x21   : > { %463 = vmatpush.bf16.msra.mxu0 %v957_v5  ;;  %1073 = vmatpush.bf16.msra.mxu1 %v957_v5 }
  0x22   : > { %1074 = vmatpush.bf16.msra.mxu2 %v957_v5  ;;  %1075 = vmatpush.bf16.msra.mxu3 %v957_v5 }
  0x25   : > { %464 = vmatpush.bf16.msra.mxu0 %v956_v6  ;;  %1076 = vmatpush.bf16.msra.mxu1 %v956_v6 }
  0x26   : > { %1077 = vmatpush.bf16.msra.mxu2 %v956_v6  ;;  %1078 = vmatpush.bf16.msra.mxu3 %v956_v6 }
  0x29   : > { %465 = vmatpush.bf16.msra.mxu0 %v955_v7  ;;  %1079 = vmatpush.bf16.msra.mxu1 %v955_v7 }
  0x2a   : > { %1080 = vmatpush.bf16.msra.mxu2 %v955_v7  ;;  %1081 = vmatpush.bf16.msra.mxu3 %v955_v7 }
  0x2c   : > { %466 = vmatmul.bf16.vlgmr.msra.gmra.mxu0 %v939_v8  ;;  %486 = vmatmul.bf16.vlgmr.msra.gmra.mxu1 %v943_v9 }
  0x2d   : > { %506 = vmatmul.bf16.vlgmr.msra.gmra.mxu2 %v947_v10  ;;  %526 = vmatmul.bf16.vlgmr.msra.gmra.mxu3 %v951_v11 }
  0x3c   : > { %471 = vmatmul.bf16.gmra.mxu0 %v940_v12  ;;  %491 = vmatmul.bf16.gmra.mxu1 %v944_v13 }
  0x3d   : > { %511 = vmatmul.bf16.gmra.mxu2 %v948_v14  ;;  %531 = vmatmul.bf16.gmra.mxu3 %v952_v15 }
  0x4c   : > { %476 = vmatmul.bf16.gmra.mxu0 %v941_v16  ;;  %496 = vmatmul.bf16.gmra.mxu1 %v945_v17 }
  0x4d   : > { %516 = vmatmul.bf16.gmra.mxu2 %v949_v18  ;;  %536 = vmatmul.bf16.gmra.mxu3 %v953_v19 }
  0x5c   : > { %481 = vmatmul.bf16.gmra.mxu0 %v942_v20  ;;  %501 = vmatmul.bf16.gmra.mxu1 %v946_v21 }
  0x5d   : > { %521 = vmatmul.bf16.gmra.mxu2 %v950_v22  ;;  %541 = vmatmul.bf16.gmra.mxu3 %v954_v23 }
  0xa9   : > { %v467_v24 = vpop.f32.mrf.mxu0  ;;  %v487_v25 = vpop.f32.mrf.mxu1 }
  0xaa   : > { %v551_v27 = vmul.f32 %v1231_v26, %v467_v24  ;;  %v559_v29 = vmul.f32 %v1231_v26, %v487_v25 }
  0xac   : > { %v587_v34 = vadd.f32 %v1237_v28, %v551_v27  ;;  %v595_v35 = vadd.f32 %v1237_v28, %v559_v29 }
  0xae   : > { %v619_v42 = vmax.f32 %v587_v34, 0.0  ;;  %v627_v43 = vmax.f32 %v595_v35, 0.0 }
  0xb0   : > { %v507_v30 = vpop.f32.mrf.mxu2  ;;  %v527_v31 = vpop.f32.mrf.mxu3 }
  0xb1   : > { %v469_v32 = vpop.f32.mrf.mxu0  ;;  %v489_v33 = vpop.f32.mrf.mxu1  ;;  %v567_v40 = vmul.f32 %v1231_v26, %v507_v30  ;;  %v575_v41 = vmul.f32 %v1231_v26, %v527_v31 }
  0xb2   : > { %v552_v36 = vmul.f32 %v1231_v26, %v469_v32  ;;  %v560_v37 = vmul.f32 %v1231_v26, %v489_v33 }
  0xb3   : > { %v603_v50 = vadd.f32 %v1237_v28, %v567_v40  ;;  %v611_v51 = vadd.f32 %v1237_v28, %v575_v41 }
  0xb4   : > { %v588_v38 = vadd.f32 %v1237_v28, %v552_v36  ;;  %v596_v39 = vadd.f32 %v1237_v28, %v560_v37 }
  0xb5   : > { %v635_v58 = vmax.f32 %v603_v50, 0.0  ;;  %v643_v59 = vmax.f32 %v611_v51, 0.0 }
  0xb6   : > { %v620_v44 = vmax.f32 %v588_v38, 0.0  ;;  %v628_v45 = vmax.f32 %v596_v39, 0.0 }
  0xb8   : > { %v966_v46 = vpack.c.bf16 %v620_v44, %v619_v42  ;;  %v986_v47 = vpack.c.bf16 %v628_v45, %v627_v43  ;;  %v509_v48 = vpop.f32.mrf.mxu2  ;;  %v529_v49 = vpop.f32.mrf.mxu3 }
  0xb9   : > { %v568_v52 = vmul.f32 %v1231_v26, %v509_v48  ;;  %v576_v53 = vmul.f32 %v1231_v26, %v529_v49  ;;  %v472_v54 = vpop.f32.mrf.mxu0  ;;  %v492_v55 = vpop.f32.mrf.mxu1 }
  0xba   : > { %967 = vst [vmem:[%s1253_s23] sm:$0xff] %v966_v46   ;;  %v553_v62 = vmul.f32 %v1231_v26, %v472_v54  ;;  %v561_v63 = vmul.f32 %v1231_v26, %v492_v55 }
  0xbb   : > { %1046 = vst [vmem:[%s1253_s23 + $0x20] sm:$0xff] %v986_v47   ;;  %v604_v56 = vadd.f32 %v1237_v28, %v568_v52  ;;  %v612_v57 = vadd.f32 %v1237_v28, %v576_v53 }
  0xbc   : > { %v589_v6 = vadd.f32 %v1237_v28, %v553_v62  ;;  %v597_v7 = vadd.f32 %v1237_v28, %v561_v63 }
  0xbd   : > { %v636_v60 = vmax.f32 %v604_v56, 0.0  ;;  %v644_v61 = vmax.f32 %v612_v57, 0.0 }
  0xbe   : > { %v621_v14 = vmax.f32 %v589_v6, 0.0  ;;  %v629_v15 = vmax.f32 %v597_v7, 0.0 }
  0xbf   : > { %v1006_v0 = vpack.c.bf16 %v636_v60, %v635_v58  ;;  %v1026_v1 = vpack.c.bf16 %v644_v61, %v643_v59 }
  0xc0   : > { %v512_v2 = vpop.f32.mrf.mxu2  ;;  %v532_v3 = vpop.f32.mrf.mxu3 }
  0xc1   : > { %1050 = vst [vmem:[%s1253_s23 + $0x40] sm:$0xff] %v1006_v0   ;;  %v474_v4 = vpop.f32.mrf.mxu0  ;;  %v494_v5 = vpop.f32.mrf.mxu1  ;;  %v569_v12 = vmul.f32 %v1231_v26, %v512_v2  ;;  %v577_v13 = vmul.f32 %v1231_v26, %v532_v3 }
  0xc2   : > { %1054 = vst [vmem:[%s1253_s23 + $0x60] sm:$0xff] %v1026_v1   ;;  %v554_v8 = vmul.f32 %v1231_v26, %v474_v4  ;;  %v562_v9 = vmul.f32 %v1231_v26, %v494_v5 }
  0xc3   : > { %v605_v22 = vadd.f32 %v1237_v28, %v569_v12  ;;  %v613_v23 = vadd.f32 %v1237_v28, %v577_v13 }
  0xc4   : > { %v590_v10 = vadd.f32 %v1237_v28, %v554_v8  ;;  %v598_v11 = vadd.f32 %v1237_v28, %v562_v9 }
  0xc5   : > { %v637_v32 = vmax.f32 %v605_v22, 0.0  ;;  %v645_v33 = vmax.f32 %v613_v23, 0.0 }
  0xc6   : > { %v622_v16 = vmax.f32 %v590_v10, 0.0  ;;  %v630_v17 = vmax.f32 %v598_v11, 0.0 }
  0xc8   : > { %v971_v18 = vpack.c.bf16 %v622_v16, %v621_v14  ;;  %v991_v19 = vpack.c.bf16 %v630_v17, %v629_v15  ;;  %v514_v20 = vpop.f32.mrf.mxu2  ;;  %v534_v21 = vpop.f32.mrf.mxu3 }
  0xc9   : > { %v570_v24 = vmul.f32 %v1231_v26, %v514_v20  ;;  %v578_v25 = vmul.f32 %v1231_v26, %v534_v21  ;;  %v477_v27 = vpop.f32.mrf.mxu0  ;;  %v497_v29 = vpop.f32.mrf.mxu1 }
  0xca   : > { %1043 = vst [vmem:[%s1253_s23 + $0x8] sm:$0xff] %v971_v18   ;;  %v555_v36 = vmul.f32 %v1231_v26, %v477_v27  ;;  %v563_v37 = vmul.f32 %v1231_v26, %v497_v29 }
  0xcb   : > { %1047 = vst [vmem:[%s1253_s23 + $0x28] sm:$0xff] %v991_v19   ;;  %v606_v30 = vadd.f32 %v1237_v28, %v570_v24  ;;  %v614_v31 = vadd.f32 %v1237_v28, %v578_v25 }
  0xcc   : > { %v591_v44 = vadd.f32 %v1237_v28, %v555_v36  ;;  %v599_v45 = vadd.f32 %v1237_v28, %v563_v37 }
  0xcd   : > { %v638_v34 = vmax.f32 %v606_v30, 0.0  ;;  %v646_v35 = vmax.f32 %v614_v31, 0.0 }
  0xce   : > { %v623_v52 = vmax.f32 %v591_v44, 0.0  ;;  %v631_v53 = vmax.f32 %v599_v45, 0.0 }
  0xcf   : > { %v1011_v38 = vpack.c.bf16 %v638_v34, %v637_v32  ;;  %v1031_v39 = vpack.c.bf16 %v646_v35, %v645_v33 }
  0xd0   : > { %v517_v40 = vpop.f32.mrf.mxu2  ;;  %v537_v41 = vpop.f32.mrf.mxu3 }
  0xd1   : > { %1051 = vst [vmem:[%s1253_s23 + $0x48] sm:$0xff] %v1011_v38   ;;  %v479_v42 = vpop.f32.mrf.mxu0  ;;  %v499_v43 = vpop.f32.mrf.mxu1  ;;  %v571_v50 = vmul.f32 %v1231_v26, %v517_v40  ;;  %v579_v51 = vmul.f32 %v1231_v26, %v537_v41 }
  0xd2   : > { %1055 = vst [vmem:[%s1253_s23 + $0x68] sm:$0xff] %v1031_v39   ;;  %v556_v46 = vmul.f32 %v1231_v26, %v479_v42  ;;  %v564_v47 = vmul.f32 %v1231_v26, %v499_v43 }
  0xd3   : > { %v607_v60 = vadd.f32 %v1237_v28, %v571_v50  ;;  %v615_v61 = vadd.f32 %v1237_v28, %v579_v51 }
  0xd4   : > { %v592_v48 = vadd.f32 %v1237_v28, %v556_v46  ;;  %v600_v49 = vadd.f32 %v1237_v28, %v564_v47 }
  0xd5   : > { %v639_v4 = vmax.f32 %v607_v60, 0.0  ;;  %v647_v5 = vmax.f32 %v615_v61, 0.0 }
  0xd6   : > { %v624_v54 = vmax.f32 %v592_v48, 0.0  ;;  %v632_v55 = vmax.f32 %v600_v49, 0.0 }
  0xd8   : > { %v976_v56 = vpack.c.bf16 %v624_v54, %v623_v52  ;;  %v996_v57 = vpack.c.bf16 %v632_v55, %v631_v53  ;;  %v519_v58 = vpop.f32.mrf.mxu2  ;;  %v539_v59 = vpop.f32.mrf.mxu3 }
  0xd9   : > { %v572_v62 = vmul.f32 %v1231_v26, %v519_v58  ;;  %v580_v63 = vmul.f32 %v1231_v26, %v539_v59  ;;  %v482_v0 = vpop.f32.mrf.mxu0  ;;  %v502_v1 = vpop.f32.mrf.mxu1 }
  0xda   : > { %1044 = vst [vmem:[%s1253_s23 + $0x10] sm:$0xff] %v976_v56   ;;  %v557_v8 = vmul.f32 %v1231_v26, %v482_v0  ;;  %v565_v9 = vmul.f32 %v1231_v26, %v502_v1 }
  0xdb   : > { %1048 = vst [vmem:[%s1253_s23 + $0x30] sm:$0xff] %v996_v57   ;;  %v608_v2 = vadd.f32 %v1237_v28, %v572_v62  ;;  %v616_v3 = vadd.f32 %v1237_v28, %v580_v63 }
  0xdc   : > { %v593_v16 = vadd.f32 %v1237_v28, %v557_v8  ;;  %v601_v17 = vadd.f32 %v1237_v28, %v565_v9 }
  0xdd   : > { %v640_v6 = vmax.f32 %v608_v2, 0.0  ;;  %v648_v7 = vmax.f32 %v616_v3, 0.0 }
  0xde   : > { %v625_v24 = vmax.f32 %v593_v16, 0.0  ;;  %v633_v25 = vmax.f32 %v601_v17, 0.0 }
  0xdf   : > { %v1016_v10 = vpack.c.bf16 %v640_v6, %v639_v4  ;;  %v1036_v11 = vpack.c.bf16 %v648_v7, %v647_v5 }
  0xe0   : > { %v522_v12 = vpop.f32.mrf.mxu2  ;;  %v542_v13 = vpop.f32.mrf.mxu3 }
  0xe1   : > { %1052 = vst [vmem:[%s1253_s23 + $0x50] sm:$0xff] %v1016_v10   ;;  %v484_v14 = vpop.f32.mrf.mxu0  ;;  %v504_v15 = vpop.f32.mrf.mxu1  ;;  %v573_v22 = vmul.f32 %v1231_v26, %v522_v12  ;;  %v581_v23 = vmul.f32 %v1231_v26, %v542_v13 }
  0xe2   : > { %1056 = vst [vmem:[%s1253_s23 + $0x70] sm:$0xff] %v1036_v11   ;;  %v558_v18 = vmul.f32 %v1231_v26, %v484_v14  ;;  %v566_v19 = vmul.f32 %v1231_v26, %v504_v15 }
  0xe3   : > { %v609_v34 = vadd.f32 %v1237_v28, %v573_v22  ;;  %v617_v35 = vadd.f32 %v1237_v28, %v581_v23 }
  0xe4   : > { %v594_v20 = vadd.f32 %v1237_v28, %v558_v18  ;;  %v602_v21 = vadd.f32 %v1237_v28, %v566_v19 }
  0xe5   : > { %v641_v40 = vmax.f32 %v609_v34, 0.0  ;;  %v649_v41 = vmax.f32 %v617_v35, 0.0 }
  0xe6   : > { %v626_v27 = vmax.f32 %v594_v20, 0.0  ;;  %v634_v29 = vmax.f32 %v602_v21, 0.0 }
  0xe8   : > { %v981_v30 = vpack.c.bf16 %v626_v27, %v625_v24  ;;  %v1001_v31 = vpack.c.bf16 %v634_v29, %v633_v25  ;;  %v524_v32 = vpop.f32.mrf.mxu2  ;;  %v544_v33 = vpop.f32.mrf.mxu3 }
  0xe9   : > { %v574_v36 = vmul.f32 %v1231_v26, %v524_v32  ;;  %v582_v37 = vmul.f32 %v1231_v26, %v544_v33 }
  0xea   : > { %1045 = vst [vmem:[%s1253_s23 + $0x18] sm:$0xff] %v981_v30  }
  0xeb   : > { %1049 = vst [vmem:[%s1253_s23 + $0x38] sm:$0xff] %v1001_v31   ;;  %v610_v38 = vadd.f32 %v1237_v28, %v574_v36  ;;  %v618_v39 = vadd.f32 %v1237_v28, %v582_v37 }
  0xed   : > { %v642_v42 = vmax.f32 %v610_v38, 0.0  ;;  %v650_v43 = vmax.f32 %v618_v39, 0.0 }
  0xef   : > { %v1021_v44 = vpack.c.bf16 %v642_v42, %v641_v40  ;;  %v1041_v45 = vpack.c.bf16 %v650_v43, %v649_v41 }
  0xf1   : > { %1053 = vst [vmem:[%s1253_s23 + $0x58] sm:$0xff] %v1021_v44  }
  0xf2   : > { %1057 = vst [vmem:[%s1253_s23 + $0x78] sm:$0xff] %v1041_v45  }
  0xf3 PF: > { %s14_s17 = sadd.s32 1, %s1130_s17   ;;  %s1339_s15 = smov %s1126_s16 }
  0xf4   : > { %p11_p5 = scmp.ge.s32.totalorder %s14_s17, 4   ;;  %s1340_s16 = smov %s1342_s18 }
  0xf6   :  { %13 = sbr.rel (!%p11_p5) target bundleno = 2 (0x2), region = 75 }

</bundles_post_ra>
